<compile_context>
chip_gen: v6e
topology: v6e:2x2x1
jax: 0.10.0
libtpu: 0.0.40
codegen_flags: <defaults>
</compile_context>

<pallas_src>
import functools

import jax
import jax.numpy as jnp
from jax import lax
from jax.experimental import pallas as pl
from jax.experimental.pallas import tpu as pltpu


def _head_kernel(x_ref, wqkv_ref, o_ref, *, batch, seq, head_size, scale):
    """Whole problem in one grid step.

    x_ref:    (B*T, C)   bf16
    wqkv_ref: (C, 3*hs)  bf16   (columns = [Wq | Wk | Wv])
    o_ref:    (B*T, hs)  f32
    """
    hs = head_size

    # Fused QKV projection: one wide MXU matmul, f32 accumulation.
    qkv = jnp.dot(x_ref[...], wqkv_ref[...],
                  preferred_element_type=jnp.float32)            # (B*T, 3*hs) f32

    for b in range(batch):                                       # static unroll, tiny B
        r0 = b * seq
        # Fold the module's C**-0.5 scale into q (cheap: (T, hs) elements).
        q = (qkv[r0:r0 + seq, 0 * hs:1 * hs] * scale).astype(jnp.bfloat16)
        k = qkv[r0:r0 + seq, 1 * hs:2 * hs].astype(jnp.bfloat16)
        v = qkv[r0:r0 + seq, 2 * hs:3 * hs].astype(jnp.bfloat16)

        # Scores: contract the head dim of q and k directly (no k.T materialization).
        s = lax.dot_general(q, k, (((1,), (1,)), ((), ())),
                            preferred_element_type=jnp.float32)  # (T, T) f32

        # Numerically-stable softmax; normalization deferred to the (T, hs) output.
        s = s - jnp.max(s, axis=-1, keepdims=True)
        p = jnp.exp(s)                                           # (T, T) f32
        denom = jnp.sum(p, axis=-1, keepdims=True)               # (T, 1) f32

        acc = jnp.dot(p.astype(jnp.bfloat16), v,
                      preferred_element_type=jnp.float32)        # (T, hs) f32
        out_b = acc * pl.reciprocal(denom, approx=True)

        o_ref[pl.ds(r0, seq), :] = out_b.astype(o_ref.dtype)


def head_attention(x, wq, wk, wv):
    """x: (B, T, C); wq/wk/wv: (C, head_size) (pre-transposed nn.Linear weights)."""
    B, T, C = x.shape
    hs = wq.shape[1]
    scale = float(C) ** -0.5          # module scales by n_embd**-0.5, not head_size

    # bf16 operands halve HBM->VMEM traffic; all matmuls accumulate in f32.
    x2d = x.reshape(B * T, C).astype(jnp.bfloat16)
    wqkv = jnp.concatenate([wq, wk, wv], axis=1).astype(jnp.bfloat16)   # (C, 3*hs)

    kernel = functools.partial(_head_kernel, batch=B, seq=T,
                               head_size=hs, scale=scale)

    out2d = pl.pallas_call(
        kernel,
        out_shape=jax.ShapeDtypeStruct((B * T, hs), jnp.float32),
        grid_spec=pltpu.PrefetchScalarGridSpec(
            num_scalar_prefetch=0,
            grid=(1,),                                 # one step: per-step overhead
            in_specs=[                                 # dominates at these sizes
                pl.BlockSpec((B * T, C), lambda i: (0, 0)),      # activations
                pl.BlockSpec((C, 3 * hs), lambda i: (0, 0)),     # fused [Wq|Wk|Wv]
            ],
            out_specs=pl.BlockSpec((B * T, hs), lambda i: (0, 0)),
        ),
        compiler_params=pltpu.CompilerParams(
            dimension_semantics=("arbitrary",)),
    )(x2d, wqkv)

    return out2d.reshape(B, T, hs).astype(x.dtype)


def _reference(x, wq, wk, wv):
    """Plain-JAX f32 reference mirroring Head.forward (eval mode, no mask)."""
    B, T, C = x.shape
    scale = float(C) ** -0.5
    q = x @ wq
    k = x @ wk
    v = x @ wv
    wei = jnp.einsum("btd,bsd->bts", q, k) * scale
    wei = jax.nn.softmax(wei, axis=-1)
    return jnp.einsum("bts,bsd->btd", wei, v)


if __name__ == "__main__":
    B, T = 2, 16
    n_embd = 256                  # module-level constant in the PyTorch file
    head_size = 128               # 128-lane output => lane-dense stores

    key = jax.random.PRNGKey(0)
    kx, kq, kk, kv = jax.random.split(key, 4)
    wscale = float(n_embd) ** -0.5

    x = jax.random.normal(kx, (B, T, n_embd), jnp.float32)
    # Deterministic "Linear(bias=False)" weights, pre-transposed to (in, out).
    wq = jax.random.normal(kq, (n_embd, head_size), jnp.float32) * wscale
    wk = jax.random.normal(kk, (n_embd, head_size), jnp.float32) * wscale
    wv = jax.random.normal(kv, (n_embd, head_size), jnp.float32) * wscale

    out = jax.block_until_ready(head_attention(x, wq, wk, wv))
    ref = _reference(x, wq, wk, wv)

    assert out.shape == (B, T, head_size)
    max_err = float(jnp.max(jnp.abs(out - ref)))
    # bf16 matmul operands (f32 accumulation): tolerance loosened vs f32 reference.
    assert jnp.allclose(out, ref, atol=3e-2, rtol=3e-2), f"max abs err {max_err}"

    print("KERNEL_OK")
</pallas_src>

<mosaic_0001>
module attributes {stable_mosaic.version = 11 : i64} {
  func.func @_head_kernel(%arg0: i32, %arg1: memref<32x256xbf16, #tpu.memory_space<vmem>>, %arg2: memref<256x384xbf16, #tpu.memory_space<vmem>>, %arg3: memref<32x128xf32, #tpu.memory_space<vmem>>) attributes {dimension_semantics = [#tpu.dimension_semantics<arbitrary>], iteration_bounds = array<i64: 1>, scalar_prefetch = 0 : i64, scratch_operands = 0 : i64, tpu.core_type = #tpu.core_type<tc>, window_params = [{pipeline_mode = #tpu.pipeline_mode<synchronous>, transform_indices = @transform_0, window_bounds = array<i64: 32, 256>}, {pipeline_mode = #tpu.pipeline_mode<synchronous>, transform_indices = @transform_1, window_bounds = array<i64: 256, 384>}, {pipeline_mode = #tpu.pipeline_mode<synchronous>, transform_indices = @transform_2, window_bounds = array<i64: 32, 128>}]} {
    %c0 = arith.constant 0 : index
    %c0_0 = arith.constant 0 : index
    %0 = vector.load %arg1[%c0, %c0_0] : memref<32x256xbf16, #tpu.memory_space<vmem>>, vector<32x256xbf16>
    %c0_1 = arith.constant 0 : index
    %c0_2 = arith.constant 0 : index
    %1 = vector.load %arg2[%c0_1, %c0_2] : memref<256x384xbf16, #tpu.memory_space<vmem>>, vector<256x384xbf16>
    %cst = arith.constant dense<0.000000e+00> : vector<32x384xf32>
    %2 = tpu.matmul %0, %1, %cst {dimension_numbers = #tpu.dot_dimension_numbers<[1], [0], [0], [1], [0, 0, 1, 1], [], []>} : vector<32x256xbf16>, vector<256x384xbf16>, vector<32x384xf32> -> vector<32x384xf32>
    %3 = vector.extract_strided_slice %2 {offsets = [0, 0], sizes = [16, 128], strides = [1, 1]} : vector<32x384xf32> to vector<16x128xf32>
    %cst_3 = arith.constant 6.250000e-02 : f32
    %4 = vector.broadcast %cst_3 : f32 to vector<16x128xf32>
    %5 = arith.mulf %3, %4 : vector<16x128xf32>
    %6 = arith.truncf %5 : vector<16x128xf32> to vector<16x128xbf16>
    %7 = vector.extract_strided_slice %2 {offsets = [0, 128], sizes = [16, 128], strides = [1, 1]} : vector<32x384xf32> to vector<16x128xf32>
    %8 = arith.truncf %7 : vector<16x128xf32> to vector<16x128xbf16>
    %9 = vector.extract_strided_slice %2 {offsets = [0, 256], sizes = [16, 128], strides = [1, 1]} : vector<32x384xf32> to vector<16x128xf32>
    %10 = arith.truncf %9 : vector<16x128xf32> to vector<16x128xbf16>
    %cst_4 = arith.constant dense<0.000000e+00> : vector<16x16xf32>
    %11 = tpu.matmul %6, %8, %cst_4 {dimension_numbers = #tpu.dot_dimension_numbers<[1], [1], [0], [0], [0, 0, 1, 0], [], []>} : vector<16x128xbf16>, vector<16x128xbf16>, vector<16x16xf32> -> vector<16x16xf32>
    %cst_5 = arith.constant dense<0xFF800000> : vector<16xf32>
    %12 = vector.multi_reduction <maximumf>, %11, %cst_5 [1] : vector<16x16xf32> to vector<16xf32>
    %13 = vector.shape_cast %12 : vector<16xf32> to vector<16x1xf32>
    %14 = vector.broadcast %13 : vector<16x1xf32> to vector<16x16xf32>
    %15 = arith.subf %11, %14 : vector<16x16xf32>
    %16 = math.exp %15 : vector<16x16xf32>
    %cst_6 = arith.constant dense<0.000000e+00> : vector<16xf32>
    %17 = vector.multi_reduction <add>, %16, %cst_6 [1] : vector<16x16xf32> to vector<16xf32>
    %18 = vector.shape_cast %17 : vector<16xf32> to vector<16x1xf32>
    %19 = arith.truncf %16 : vector<16x16xf32> to vector<16x16xbf16>
    %cst_7 = arith.constant dense<0.000000e+00> : vector<16x128xf32>
    %20 = tpu.matmul %19, %10, %cst_7 {dimension_numbers = #tpu.dot_dimension_numbers<[1], [0], [0], [1], [0, 0, 1, 1], [], []>} : vector<16x16xbf16>, vector<16x128xbf16>, vector<16x128xf32> -> vector<16x128xf32>
    %21 = tpu.reciprocal %18 {approx = true} : vector<16x1xf32> -> vector<16x1xf32>
    %22 = vector.broadcast %21 : vector<16x1xf32> to vector<16x128xf32>
    %23 = arith.mulf %20, %22 : vector<16x128xf32>
    %c0_8 = arith.constant 0 : index
    %c0_9 = arith.constant 0 : index
    %24 = vector.load %arg3[%c0_8, %c0_9] : memref<32x128xf32, #tpu.memory_space<vmem>>, vector<16x128xf32>
    tpu.vector_store %arg3[%c0_8, %c0_9], %23 {strides = array<i32>} : memref<32x128xf32, #tpu.memory_space<vmem>>, vector<16x128xf32>,
    %25 = vector.extract_strided_slice %2 {offsets = [16, 0], sizes = [16, 128], strides = [1, 1]} : vector<32x384xf32> to vector<16x128xf32>
    %cst_10 = arith.constant 6.250000e-02 : f32
    %26 = vector.broadcast %cst_10 : f32 to vector<16x128xf32>
    %27 = arith.mulf %25, %26 : vector<16x128xf32>
    %28 = arith.truncf %27 : vector<16x128xf32> to vector<16x128xbf16>
    %29 = vector.extract_strided_slice %2 {offsets = [16, 128], sizes = [16, 128], strides = [1, 1]} : vector<32x384xf32> to vector<16x128xf32>
    %30 = arith.truncf %29 : vector<16x128xf32> to vector<16x128xbf16>
    %31 = vector.extract_strided_slice %2 {offsets = [16, 256], sizes = [16, 128], strides = [1, 1]} : vector<32x384xf32> to vector<16x128xf32>
    %32 = arith.truncf %31 : vector<16x128xf32> to vector<16x128xbf16>
    %cst_11 = arith.constant dense<0.000000e+00> : vector<16x16xf32>
    %33 = tpu.matmul %28, %30, %cst_11 {dimension_numbers = #tpu.dot_dimension_numbers<[1], [1], [0], [0], [0, 0, 1, 0], [], []>} : vector<16x128xbf16>, vector<16x128xbf16>, vector<16x16xf32> -> vector<16x16xf32>
    %cst_12 = arith.constant dense<0xFF800000> : vector<16xf32>
    %34 = vector.multi_reduction <maximumf>, %33, %cst_12 [1] : vector<16x16xf32> to vector<16xf32>
    %35 = vector.shape_cast %34 : vector<16xf32> to vector<16x1xf32>
    %36 = vector.broadcast %35 : vector<16x1xf32> to vector<16x16xf32>
    %37 = arith.subf %33, %36 : vector<16x16xf32>
    %38 = math.exp %37 : vector<16x16xf32>
    %cst_13 = arith.constant dense<0.000000e+00> : vector<16xf32>
    %39 = vector.multi_reduction <add>, %38, %cst_13 [1] : vector<16x16xf32> to vector<16xf32>
    %40 = vector.shape_cast %39 : vector<16xf32> to vector<16x1xf32>
    %41 = arith.truncf %38 : vector<16x16xf32> to vector<16x16xbf16>
    %cst_14 = arith.constant dense<0.000000e+00> : vector<16x128xf32>
    %42 = tpu.matmul %41, %32, %cst_14 {dimension_numbers = #tpu.dot_dimension_numbers<[1], [0], [0], [1], [0, 0, 1, 1], [], []>} : vector<16x16xbf16>, vector<16x128xbf16>, vector<16x128xf32> -> vector<16x128xf32>
    %43 = tpu.reciprocal %40 {approx = true} : vector<16x1xf32> -> vector<16x1xf32>
    %44 = vector.broadcast %43 : vector<16x1xf32> to vector<16x128xf32>
    %45 = arith.mulf %42, %44 : vector<16x128xf32>
    %c16 = arith.constant 16 : index
    %c0_15 = arith.constant 0 : index
    %46 = vector.load %arg3[%c16, %c0_15] : memref<32x128xf32, #tpu.memory_space<vmem>>, vector<16x128xf32>
    tpu.vector_store %arg3[%c16, %c0_15], %45 {strides = array<i32>} : memref<32x128xf32, #tpu.memory_space<vmem>>, vector<16x128xf32>,
    return
  }
  func.func @transform_0(%arg0: i32) -> (i32, i32) {
    %c0_i32 = arith.constant 0 : i32
    %c0_i32_0 = arith.constant 0 : i32
    %c0_i32_1 = arith.constant 0 : i32
    return %c0_i32, %c0_i32_0 : i32, i32
  }
  func.func @transform_1(%arg0: i32) -> (i32, i32) {
    %c0_i32 = arith.constant 0 : i32
    %c0_i32_0 = arith.constant 0 : i32
    %c0_i32_1 = arith.constant 0 : i32
    return %c0_i32, %c0_i32_0 : i32, i32
  }
  func.func @transform_2(%arg0: i32) -> (i32, i32) {
    %c0_i32 = arith.constant 0 : i32
    %c0_i32_0 = arith.constant 0 : i32
    %c0_i32_1 = arith.constant 0 : i32
    return %c0_i32, %c0_i32_0 : i32, i32
  }
}

</mosaic_0001>

<bundles_post_ra>
// kernel: tpu_custom_call.1
= control target key start
LH: loop header
LB: loop body
LE: loop exit
PB: predicated region body
PF: predicated region fallthrough
CT: control target
= control target key end

     0   :  { %7 = vsyncpa [#allocation3], 0  ;;  %s1072_s0 = inlined_call_operand.hbm [shape: bf16[32,256], index: 0, kind: input, shape index: {}]   ;;  %s1073_s1 = inlined_call_operand.hbm [shape: bf16[256,384], index: 1, kind: input, shape index: {}]   ;;  %s1074_s2 = inlined_call_operand.hbm [shape: f32[32,128], index: 2, kind: output, shape index: {}]  }
   0x1   :  { %8 = vsyncpa [#allocation6], 0 }
   0x2   :  { %9 = vsyncpa [#allocation4], 0  ;;  %s1011_s9 = smov [#allocation2]  }
   0x3   :  { %s15_s10 = sshll.u32 %s1011_s9, 4  ;;  %s16_s10 = int_to_ptr.vmem [resolvable:$true] %s15_s10 }
   0x4   :  { %s953_s11 = scalar_lea.vmem %s16_s10, 512  ;;  %p958_p1 = scmp.lt.s32.totalorder %s16_s10, %s16_s10 }
   0x5   :  { %p954_p0 = scmp.ne.s32.totalorder %s16_s10, %s953_s11  ;;  %p959_p2 = scmp.lt.s32.totalorder %s953_s11, %s953_s11 }
   0x7   :  { %p960_p3 = por %p959_p2, %p958_p1 }
   0x9   :  { %p961_p4 = pnand %p960_p3, %p954_p0 }
   0xb   :  { %964 = shalt.err (!%p961_p4)
}
   0xc   :  { %s1012_s12 = smov 128   ;;  %s1013_s13 = smov 8  }
   0xd   :  { %21 = dma.hbm_to_vmem [thread:$0]  %s1072_s0, 512, %s16_s10, [#allocation3], %s1012_s12, %s1012_s12, %s1013_s13  }
   0xe   :  { %s1014_s16 = smov [#allocation5]  }
   0xf   :  { %s27_s17 = sshll.u32 %s1014_s16, 4  ;;  %s28_s17 = int_to_ptr.vmem [resolvable:$true] %s27_s17 }
  0x10   :  { %s973_s18 = scalar_lea.vmem %s28_s17, 6144  ;;  %p978_p6 = scmp.lt.s32.totalorder %s28_s17, %s28_s17 }
  0x11   :  { %p974_p5 = scmp.ne.s32.totalorder %s28_s17, %s973_s18  ;;  %p979_p7 = scmp.lt.s32.totalorder %s973_s18, %s973_s18 }
  0x13   :  { %p980_p8 = por %p979_p7, %p978_p6 }
  0x15   :  { %p981_p9 = pnand %p980_p8, %p974_p5 }
  0x17   :  { %984 = shalt.err (!%p981_p9)
}
  0x18   :  { %s1015_s19 = smov 192   ;;  %s1016_s20 = smov 12  }
  0x19   :  { %33 = dma.hbm_to_vmem [thread:$0]  %s1073_s1, 6144, %s28_s17, [#allocation6], %s1015_s19, %s1015_s19, %s1016_s20  }
  0x1a   :  { %1005 = dma.done.wait [#allocation3], 512  }
  0x1b   :  { %1006 = vsyncadd [#allocation3], 4294966784 }
  0x1c   :  { %1007 = dma.done.wait [#allocation6], 6144  }
  0x1d   :  { %1008 = vsyncadd [#allocation6], 4294961152  ;;  %v859_v0 = vld [vmem:[#allocation5 + $0xac] ss:$12 sps:$4 sm:$0xff]   ;;  %v861_v1 = vld [vmem:[#allocation5 + $0xa8] ss:$12 sps:$4 sm:$0xff]  }
  0x1e   :  { %385 = vmatprep.subr.bf16.mxu0 %v859_v0  ;;  %v862_v2 = vld [vmem:[#allocation5 + $0x94] ss:$12 sps:$4 sm:$0xff]   ;;  %v864_v3 = vld [vmem:[#allocation5 + $0x90] ss:$12 sps:$4 sm:$0xff]   ;;  %v867_v5 = vld [vmem:[#allocation5 + $0x78] ss:$12 sps:$4 sm:$0xff]  }
  0x1f   :  { %386 = vmatpush1.bf16.msra.mxu0 %v861_v1  ;;  %v865_v4 = vld [vmem:[#allocation5 + $0x7c] ss:$12 sps:$4 sm:$0xff]   ;;  %v868_v6 = vld [vmem:[#allocation5 + $0x64] ss:$12 sps:$4 sm:$0xff]   ;;  %v870_v7 = vld [vmem:[#allocation5 + $0x60] ss:$12 sps:$4 sm:$0xff]  }
  0x20   :  { %387 = vmatprep.subr.bf16.mxu0 %v862_v2  ;;  %v871_v8 = vld [vmem:[#allocation5 + $0x4c] ss:$12 sps:$4 sm:$0xff]   ;;  %v873_v9 = vld [vmem:[#allocation5 + $0x48] ss:$12 sps:$4 sm:$0xff]   ;;  %v876_v11 = vld [vmem:[#allocation5 + $0x30] ss:$12 sps:$4 sm:$0xff]  }
  0x21   :  { %v874_v10 = vld [vmem:[#allocation5 + $0x34] ss:$12 sps:$4 sm:$0xff]   ;;  %v877_v12 = vld [vmem:[#allocation5 + $0x1c] ss:$12 sps:$4 sm:$0xff]   ;;  %v879_v13 = vld [vmem:[#allocation5 + $0x18] ss:$12 sps:$4 sm:$0xff]  }
  0x22   :  { %v880_v14 = vld [vmem:[#allocation5 + $0x4] ss:$12 sps:$4 sm:$0xff]   ;;  %v882_v18 = vld [vmem:[#allocation5] ss:$12 sps:$4 sm:$0xff]   ;;  %v885_v23 = vld [vmem:[#allocation5 + $0x168] ss:$12 sps:$4 sm:$0xff]  }
  0x23   :  { %388 = vmatpush1.bf16.msra.mxu0 %v864_v3  ;;  %v909_v15 = vld [vmem:[#allocation2 + $0x4] ss:$8 sps:$4 sm:$0xff]   ;;  %v910_v16 = vld [vmem:[#allocation5 + $0x170] ss:$12 sps:$4 sm:$0xff]   ;;  %v916_v25 = vld [vmem:[#allocation5 + $0x128] ss:$12 sps:$4 sm:$0xff]  }
  0x24   :  { %389 = vmatprep.subr.bf16.mxu0 %v865_v4  ;;  %417 = vmatprep.mubr.bf16.mxu0 %v909_v15  ;;  %v911_v17 = vld [vmem:[#allocation5 + $0xb0] ss:$12 sps:$4 sm:$0xff]   ;;  %v912_v19 = vld [vmem:[#allocation5 + $0x158] ss:$12 sps:$4 sm:$0xff]   ;;  %v914_v21 = vld [vmem:[#allocation5 + $0x140] ss:$12 sps:$4 sm:$0xff]  }
  0x25   :  { %790 = vmatprep.subr.bf16.mxu1 %v910_v16  ;;  %470 = vmatprep.mubr.bf16.mxu1 %v909_v15  ;;  %v913_v20 = vld [vmem:[#allocation5 + $0x98] ss:$12 sps:$4 sm:$0xff]   ;;  %v915_v24 = vld [vmem:[#allocation5 + $0x80] ss:$12 sps:$4 sm:$0xff]   ;;  %v888_v27 = vld [vmem:[#allocation5 + $0x150] ss:$12 sps:$4 sm:$0xff]  }
  0x26   :  { %791 = vmatpush3.bf16.msra.mxu1 %v911_v17  ;;  %v883_v22 = vld [vmem:[#allocation5 + $0x16c] ss:$12 sps:$4 sm:$0xff]   ;;  %v886_v26 = vld [vmem:[#allocation5 + $0x154] ss:$12 sps:$4 sm:$0xff]   ;;  %v918_v29 = vld [vmem:[#allocation5 + $0x110] ss:$12 sps:$4 sm:$0xff]  }
  0x27   :  { %390 = vmatpush1.bf16.msra.mxu0 %v867_v5  ;;  %792 = vmatprep.subr.bf16.mxu1 %v912_v19  ;;  %v917_v28 = vld [vmem:[#allocation5 + $0x68] ss:$12 sps:$4 sm:$0xff]   ;;  %v919_v31 = vld [vmem:[#allocation5 + $0x50] ss:$12 sps:$4 sm:$0xff]   ;;  %v891_v32 = vld [vmem:[#allocation5 + $0x138] ss:$12 sps:$4 sm:$0xff]  }
  0x28   :  { %391 = vmatprep.subr.bf16.mxu0 %v868_v6  ;;  %v889_v30 = vld [vmem:[#allocation5 + $0x13c] ss:$12 sps:$4 sm:$0xff]   ;;  %v920_v33 = vld [vmem:[#allocation5 + $0xf8] ss:$12 sps:$4 sm:$0xff]   ;;  %v894_v36 = vld [vmem:[#allocation5 + $0x120] ss:$12 sps:$4 sm:$0xff]  }
  0x29   :  { %v892_v34 = vld [vmem:[#allocation5 + $0x124] ss:$12 sps:$4 sm:$0xff]   ;;  %v922_v37 = vld [vmem:[#allocation5 + $0xe0] ss:$12 sps:$4 sm:$0xff]   ;;  %v897_v40 = vld [vmem:[#allocation5 + $0x108] ss:$12 sps:$4 sm:$0xff]  }
  0x2a   :  { %793 = vmatpush3.bf16.msra.mxu1 %v913_v20  ;;  %v921_v35 = vld [vmem:[#allocation5 + $0x38] ss:$12 sps:$4 sm:$0xff]   ;;  %v923_v39 = vld [vmem:[#allocation5 + $0x20] ss:$12 sps:$4 sm:$0xff]   ;;  %v924_v41 = vld [vmem:[#allocation5 + $0xc8] ss:$12 sps:$4 sm:$0xff]  }
  0x2b   :  { %392 = vmatpush1.bf16.msra.mxu0 %v870_v7  ;;  %794 = vmatprep.subr.bf16.mxu1 %v914_v21  ;;  %v895_v38 = vld [vmem:[#allocation5 + $0x10c] ss:$12 sps:$4 sm:$0xff]   ;;  %v898_v42 = vld [vmem:[#allocation5 + $0xf4] ss:$12 sps:$4 sm:$0xff]   ;;  %v900_v44 = vld [vmem:[#allocation5 + $0xf0] ss:$12 sps:$4 sm:$0xff]  }
  0x2c   :  { %393 = vmatprep.subr.bf16.mxu0 %v871_v8  ;;  %v925_v43 = vld [vmem:[#allocation5 + $0x8] ss:$12 sps:$4 sm:$0xff]   ;;  %v903_v46 = vld [vmem:[#allocation5 + $0xd8] ss:$12 sps:$4 sm:$0xff]   ;;  %v906_v49 = vld [vmem:[#allocation5 + $0xc0] ss:$12 sps:$4 sm:$0xff]  }
  0x2d   :  { %v901_v45 = vld [vmem:[#allocation5 + $0xdc] ss:$12 sps:$4 sm:$0xff]   ;;  %v904_v48 = vld [vmem:[#allocation5 + $0xc4] ss:$12 sps:$4 sm:$0xff]   ;;  %v1017_v52 = vmov 0.0   ;;  %vm1018_vm0 = vmmov 0  }
  0x2e   :  { %795 = vmatpush3.bf16.msra.mxu1 %v915_v24  ;;  %v907_v47 = vld [vmem:[#allocation2] ss:$8 sps:$4 sm:$0xff]   ;;  %v926_v50 = vld [vmem:[#allocation2 + $0x14] ss:$8 sps:$4 sm:$0xff]   ;;  %v928_v51 = vld [vmem:[#allocation2 + $0x10] ss:$8 sps:$4 sm:$0xff]  }
  0x2f   :  { %394 = vmatpush1.bf16.msra.mxu0 %v873_v9  ;;  %796 = vmatprep.subr.bf16.mxu1 %v916_v25  ;;  %vm533_vm1 = vcmask 130048   ;;  %s1019_s0 = smov [#allocation7]  }
  0x30   :  { %395 = vmatprep.subr.bf16.mxu0 %v874_v10  ;;  %s723_s1 = sshll.u32 %s1019_s0, 4  ;;  %s724_s1 = int_to_ptr.vmem [resolvable:$true] %s723_s1 }
  0x31   :  { %s985_s23 = scalar_lea.vmem %s724_s1, 512  ;;  %p990_p11 = scmp.lt.s32.totalorder %s724_s1, %s724_s1 }
  0x32   :  { %797 = vmatpush3.bf16.msra.mxu1 %v917_v28  ;;  %p986_p10 = scmp.ne.s32.totalorder %s724_s1, %s985_s23  ;;  %p991_p12 = scmp.lt.s32.totalorder %s985_s23, %s985_s23 }
  0x33   :  { %396 = vmatpush1.bf16.msra.mxu0 %v876_v11  ;;  %798 = vmatprep.subr.bf16.mxu1 %v918_v29 }
  0x34   :  { %397 = vmatprep.subr.bf16.mxu0 %v877_v12  ;;  %p992_p13 = por %p991_p12, %p990_p11 }
  0x36   :  { %799 = vmatpush3.bf16.msra.mxu1 %v919_v31  ;;  %p993_p0 = pnand %p992_p13, %p986_p10 }
  0x37   :  { %398 = vmatpush1.bf16.msra.mxu0 %v879_v13  ;;  %800 = vmatprep.subr.bf16.mxu1 %v920_v33 }
  0x38   :  { %399 = vmatprep.subr.bf16.mxu0 %v880_v14 }
  0x3a   :  { %801 = vmatpush3.bf16.msra.mxu1 %v921_v35 }
  0x3b   :  { %400 = vmatpush1.bf16.msra.mxu0 %v882_v18  ;;  %802 = vmatprep.subr.bf16.mxu1 %v922_v37 }
  0x3c   :  { %401 = vmatprep.subr.bf16.mxu0 %v883_v22 }
  0x3e   :  { %803 = vmatpush3.bf16.msra.mxu1 %v923_v39 }
  0x3f   :  { %402 = vmatpush2.bf16.msra.mxu0 %v885_v23  ;;  %804 = vmatprep.subr.bf16.mxu1 %v924_v41 }
  0x40   :  { %403 = vmatprep.subr.bf16.mxu0 %v886_v26 }
  0x42   :  { %805 = vmatpush3.bf16.msra.mxu1 %v925_v43 }
  0x43   :  { %404 = vmatpush2.bf16.msra.mxu0 %v888_v27  ;;  %826 = vmatprep.subr.bf16.mxu1 %v1017_v52 }
  0x44   :  { %405 = vmatprep.subr.bf16.mxu0 %v889_v30 }
  0x45   :  { %471 = vmatmul.mubr.bf16.vlgmr.msra.gmra.mxu1 %v907_v47 }
  0x46   :  { %478 = vmatprep.mubr.bf16.mxu1 %v926_v50 }
  0x47   :  { %406 = vmatpush2.bf16.msra.mxu0 %v891_v32 }
  0x48   :  { %407 = vmatprep.subr.bf16.mxu0 %v892_v34 }
  0x4b   :  { %408 = vmatpush2.bf16.msra.mxu0 %v894_v36 }
  0x4c   :  { %409 = vmatprep.subr.bf16.mxu0 %v895_v38 }
  0x4d   :  { %479 = vmatmul.mubr.bf16.gmra.mxu1 %v928_v51 }
  0x4e   :  { %828 = vmatprep.mubr.msk.bf16.mxu1 %vm1018_vm0, %v1017_v52 }
  0x4f   :  { %410 = vmatpush2.bf16.msra.mxu0 %v897_v40 }
  0x50   :  { %411 = vmatprep.subr.bf16.mxu0 %v898_v42 }
  0x53   :  { %412 = vmatpush2.bf16.msra.mxu0 %v900_v44 }
  0x54   :  { %413 = vmatprep.subr.bf16.mxu0 %v901_v45 }
  0x57   :  { %414 = vmatpush2.bf16.msra.mxu0 %v903_v46 }
  0x58   :  { %415 = vmatprep.subr.bf16.mxu0 %v904_v48 }
  0x5b   :  { %416 = vmatpush2.bf16.msra.mxu0 %v906_v49 }
  0x5e   :  { %418 = vmatmul.mubr.bf16.vlgmr.msra.gmra.mxu0 %v907_v47 }
  0x5f   :  { %427 = vmatprep.mubr.bf16.mxu0 %v926_v50 }
  0x66   :  { %428 = vmatmul.mubr.bf16.gmra.mxu0 %v928_v51 }
 0x105   :  { %v806_v53 = vpop.f32.mrf.mxu1 }
 0x107   :  { %v807_v54 = vpop.f32.mrf.mxu1 }
 0x108   :  { %v808_v62 = vadd.f32 %v807_v54, %v806_v53 }
 0x109   :  { %v809_v57 = vpop.f32.mrf.mxu1 }
 0x10b   :  { %v810_v60 = vpop.f32.mrf.mxu1 }
 0x10c   :  { %v811_v63 = vadd.f32 %v810_v60, %v809_v57 }
 0x10d   :  { %v812_v4 = vpop.f32.mrf.mxu1 }
 0x10e   :  { %v491_v2 = vpack.c.bf16 %v811_v63, %v808_v62 }
 0x10f   :  { %v813_v5 = vpop.f32.mrf.mxu1 }
 0x110   :  { %v814_v6 = vadd.f32 %v813_v5, %v812_v4 }
 0x111   :  { %v815_v7 = vpop.f32.mrf.mxu1 }
 0x113   :  { %v816_v8 = vpop.f32.mrf.mxu1 }
 0x114   :  { %v817_v9 = vadd.f32 %v816_v8, %v815_v7 }
 0x116   :  { %v607_v10 = vpack.c.bf16 %v817_v9, %v814_v6 }
 0x11e   :  { %v419_v55 = vpop.f32.mrf.mxu0 }
 0x11f   :  { %v487_v1 = vmul.f32 0.0625, %v419_v55 }
 0x120   :  { %v421_v56 = vpop.f32.mrf.mxu0 }
 0x122   :  { %v423_v58 = vpop.f32.mrf.mxu0 }
 0x123   :  { %v488_v0 = vmul.f32 0.0625, %v423_v58 }
 0x124   :  { %v425_v59 = vpop.f32.mrf.mxu0 }
 0x125   :  { %v490_v61 = vpack.c.bf16 %v425_v59, %v421_v56  ;;  %v489_v3 = vpack.c.bf16 %v488_v0, %v487_v1 }
 0x126   :  { %v429_v23 = vpop.f32.mrf.mxu0 }
 0x127   :  { %827 = vmatpush3.bf16.xpose.msra.mxu1 %v490_v61  ;;  %v603_v32 = vmul.f32 0.0625, %v429_v23 }
 0x128   :  { %832 = vmatprep.subr.bf16.mxu1 %v1017_v52  ;;  %v431_v24 = vpop.f32.mrf.mxu0 }
 0x12a   :  { %v433_v25 = vpop.f32.mrf.mxu0 }
 0x12b   :  { %v604_v33 = vmul.f32 0.0625, %v433_v25 }
 0x12c   :  { %v435_v28 = vpop.f32.mrf.mxu0 }
 0x12d   :  { %v606_v31 = vpack.c.bf16 %v435_v28, %v431_v24  ;;  %v605_v34 = vpack.c.bf16 %v604_v33, %v603_v32 }
 0x12e   :  { %829 = vmatmul.mubr.bf16.vlgmr.msra.gmra.mxu1 %v489_v3 }
 0x12f   :  { %833 = vmatpush3.bf16.msra.mxu1 %v491_v2  ;;  %834 = vmatprep.mubr.msk.bf16.mxu1 %vm1018_vm0, %v1017_v52 }
 0x130   :  { %838 = vmatprep.subr.bf16.mxu1 %v1017_v52 }
 0x1ee   :  { %v526_v11 = vpop.f32.mrf.mxu1 }
 0x1ef   :  { %v534_v12 = vsel %vm533_vm1, %v526_v11, -inf }
 0x1f0   :  { %535 = vmax.xlane.f32.xlu0 %v534_v12  ;;  %v830_v13 = vpop.f32.mrf.mxu1 }
 0x1f2   :  { %v529_v14 = vpop.f32.mrf.mxu1 }
 0x1f3   :  { %v537_v15 = vsel %vm533_vm1, %v529_v14, -inf }
 0x1f4   :  { %538 = vmax.xlane.f32.xlu0 %v537_v15  ;;  %v831_v16 = vpop.f32.mrf.mxu1 }
 0x279   :  { %v536_v17 = vpop.xlane.xlu0 %535 }
 0x27a   :  { %v540_v18 = vsub.f32 %v526_v11, %v536_v17 }
 0x27c   :  { %v542_v19 = vmul.f32 1.442695, %v540_v18 }
 0x27d   :  { %v539_v20 = vpop.xlane.xlu0 %538 }
 0x27e   :  { %929 = vpow2.f32 %v542_v19  ;;  %v541_v21 = vsub.f32 %v529_v14, %v539_v20 }
 0x280   :  { %v544_v22 = vmul.f32 1.442695, %v541_v21 }
 0x282   :  { %931 = vpow2.f32 %v544_v22 }
 0x28b   :  { %v930_v26 = vpop.eup %929 }
 0x28c   :  { %v546_v27 = vsel %vm533_vm1, %v930_v26, 0.0 }
 0x28d   :  { %547 = vadd.xlane.f32.xlu0 %v546_v27 }
 0x28f   :  { %v932_v29 = vpop.eup %931 }
 0x290   :  { %v552_v30 = vpack.c.bf16 %v932_v29, %v930_v26  ;;  %v549_v48 = vsel %vm533_vm1, %v932_v29, 0.0 }
 0x292   :  { %835 = vmatmul.mubr.msk.bf16.vlgmr.msra.gmra.mxu1 %vm533_vm1, %v552_v30 }
 0x293   :  { %839 = vmatpush3.bf16.xpose.msra.mxu1 %v606_v31  ;;  %840 = vmatprep.mubr.msk.bf16.mxu1 %vm1018_vm0, %v1017_v52 }
 0x294   :  { %844 = vmatprep.subr.bf16.mxu1 %v1017_v52 }
 0x29a   :  { %841 = vmatmul.mubr.bf16.vlgmr.msra.gmra.mxu1 %v605_v34 }
 0x29b   :  { %845 = vmatpush3.bf16.msra.mxu1 %v607_v10  ;;  %846 = vmatprep.mubr.msk.bf16.mxu1 %vm1018_vm0, %v1017_v52 }
 0x316   :  { %v548_v35 = vpop.xlane.xlu0 %547 }
 0x317   :  { %933 = vrcp.f32 %v548_v35 }
 0x324   :  { %v934_v36 = vpop.eup %933 }
 0x352   :  { %v590_v37 = vpop.f32.mrf.mxu1 }
 0x353   :  { %v599_v38 = vmul.f32 %v934_v36, %v590_v37 }
 0x354   :  { %v836_v39 = vpop.f32.mrf.mxu1 }
 0x355   :  { %601 = vst [vmem:[#allocation7] sm:$0xff] %v599_v38 }
 0x356   :  { %v593_v40 = vpop.f32.mrf.mxu1 }
 0x358   :  { %v837_v41 = vpop.f32.mrf.mxu1 }
 0x35a   :  { %v642_v42 = vpop.f32.mrf.mxu1 }
 0x35b   :  { %v649_v43 = vsel %vm533_vm1, %v642_v42, -inf }
 0x35c   :  { %650 = vmax.xlane.f32.xlu1 %v649_v43  ;;  %v842_v44 = vpop.f32.mrf.mxu1 }
 0x35e   :  { %v645_v45 = vpop.f32.mrf.mxu1 }
 0x35f   :  { %v652_v46 = vsel %vm533_vm1, %v645_v45, -inf }
 0x360   :  { %653 = vmax.xlane.f32.xlu1 %v652_v46  ;;  %v843_v47 = vpop.f32.mrf.mxu1 }
 0x364   :  { %550 = vadd.xlane.f32.xlu1 %v549_v48 }
 0x3e5   :  { %v651_v49 = vpop.xlane.xlu1 %650 }
 0x3e6   :  { %v655_v50 = vsub.f32 %v642_v42, %v651_v49 }
 0x3e8   :  { %v657_v51 = vmul.f32 1.442695, %v655_v50 }
 0x3e9   :  { %v654_v52 = vpop.xlane.xlu1 %653 }
 0x3ea   :  { %935 = vpow2.f32 %v657_v51  ;;  %v656_v53 = vsub.f32 %v645_v45, %v654_v52 }
 0x3ec   :  { %v659_v54 = vmul.f32 1.442695, %v656_v53 }
 0x3ed   :  { %v551_v55 = vpop.xlane.xlu1 %550 }
 0x3ee   :  { %937 = vpow2.f32 %v659_v54 }
 0x3ef   :  { %939 = vrcp.f32 %v551_v55 }
 0x3f7   :  { %v936_v56 = vpop.eup %935 }
 0x3f8   :  { %v661_v57 = vsel %vm533_vm1, %v936_v56, 0.0 }
 0x3f9   :  { %662 = vadd.xlane.f32.xlu0 %v661_v57 }
 0x3fb   :  { %v938_v58 = vpop.eup %937 }
 0x3fc   :  { %v940_v59 = vpop.eup %939  ;;  %v664_v60 = vsel %vm533_vm1, %v938_v58, 0.0  ;;  %v667_v61 = vpack.c.bf16 %v938_v58, %v936_v56 }
 0x3fd   :  { %665 = vadd.xlane.f32.xlu1 %v664_v60  ;;  %v600_v62 = vmul.f32 %v940_v59, %v593_v40 }
 0x3fe   :  { %847 = vmatmul.mubr.msk.bf16.vlgmr.msra.gmra.mxu1 %vm533_vm1, %v667_v61 }
 0x3ff   :  { %602 = vst [vmem:[#allocation7 + $0x8] sm:$0xff] %v600_v62 }
 0x482   :  { %v663_v63 = vpop.xlane.xlu0 %662 }
 0x483   :  { %941 = vrcp.f32 %v663_v63 }
 0x486   :  { %v666_v0 = vpop.xlane.xlu1 %665 }
 0x487   :  { %943 = vrcp.f32 %v666_v0 }
 0x490   :  { %v942_v1 = vpop.eup %941 }
 0x494   :  { %v944_v5 = vpop.eup %943 }
 0x4be   :  { %v705_v2 = vpop.f32.mrf.mxu1 }
 0x4bf   :  { %v714_v3 = vmul.f32 %v942_v1, %v705_v2 }
 0x4c0   :  { %v848_v4 = vpop.f32.mrf.mxu1 }
 0x4c1   :  { %716 = vst [vmem:[#allocation7 + $0x10] sm:$0xff] %v714_v3 }
 0x4c2   :  { %v708_v6 = vpop.f32.mrf.mxu1 }
 0x4c3   :  { %v715_v7 = vmul.f32 %v944_v5, %v708_v6 }
 0x4c4   :  { %v849_v8 = vpop.f32.mrf.mxu1 }
 0x4c5   :  { %717 = vst [vmem:[#allocation7 + $0x18] sm:$0xff] %v715_v7 }
 0x4c6   :  { %996 = shalt.err (!%p993_p0)
}
 0x4c7   :  { %729 = dma.vmem_to_hbm [thread:$0]  %s724_s1, 512, %s1074_s2, [#allocation4], %s1012_s12, %s1012_s12, %s1013_s13  }
 0x4c8   :  { %1009 = dma.done.wait [#allocation4], 512  }
 0x4c9   :  { %1010 = vsyncadd [#allocation4], 4294966784 }
 0x4ca   :  { %733 = vsyncpa [#allocation3], 1 }
 0x4cb   :  { %734 = vsyncpa [#allocation6], 1 }
 0x4cc   :  { %735 = vsyncpa [#allocation4], 1 }

</bundles_post_ra>
